<compile_context>
chip_gen: v5e
topology: v5e:2x2
jax: 0.10.0
libtpu: 0.0.40
codegen_flags: <defaults>
</compile_context>

<pallas_src>
import functools

import jax
import jax.numpy as jnp
from jax import lax
from jax.experimental import pallas as pl
from jax.experimental.pallas import tpu as pltpu


# ----------------------------------------------------------------------------
# Pallas kernel: fused CMMFA math for one (batch, spatial-tile) block.
# Layout inside the kernel: (channels, spatial) — lanes carry spatial.
# ----------------------------------------------------------------------------
def cmmfa_kernel(
    patches_ref, rgb_ref, depth_ref,          # streamed activations (.., tile_s)
    wp_ref, wmr_ref, wmd_ref, bpre_ref,       # scale-folded p2c / merge weights
    w12_ref, b12_ref,                         # fused conv_c1 || conv_c2
    rgb_out_ref, depth_out_ref, pre_out_ref,  # outputs
):
    rgb = rgb_ref[...]            # (C, tile_s) f32
    depth = depth_ref[...]        # (C, tile_s) f32

    # pre = (1-rho)*conv_p_to_c(pre_cmmfa) + rho*conv_merge(gamma*rgb + (1-gamma)*depth)
    # rho / gamma are already folded into wp/wmr/wmd/bpre by the wrapper.
    pre = (
        jnp.dot(wp_ref[...], patches_ref[...], preferred_element_type=jnp.float32)
        + jnp.dot(wmr_ref[...], rgb.astype(jnp.bfloat16),
                  preferred_element_type=jnp.float32)
        + jnp.dot(wmd_ref[...], depth.astype(jnp.bfloat16),
                  preferred_element_type=jnp.float32)
        + bpre_ref[...]
    )

    # conv_c1 and conv_c2 fused into one (2C, C) @ (C, tile_s) matmul.
    act = jax.nn.sigmoid(
        jnp.dot(w12_ref[...], pre.astype(jnp.bfloat16),
                preferred_element_type=jnp.float32)
        + b12_ref[...])
    C = rgb.shape[0]
    a1 = act[:C, :]
    a2 = act[C:, :]

    rgb_new = rgb + a1 * (rgb + depth)            # uses OLD depth
    depth_new = depth + a2 * (depth + rgb_new)    # uses NEW rgb (torch rebinding)

    rgb_out_ref[...] = rgb_new
    depth_out_ref[...] = depth_new
    pre_out_ref[...] = pre


# ----------------------------------------------------------------------------
# Wrapper: NCHW kept end-to-end (only free reshapes), im2col glue, pallas_call.
# ----------------------------------------------------------------------------
def _round_up(x, m):
    return ((x + m - 1) // m) * m


def cmmfa_forward(rgb, depth, pre_cmmfa, params, *, tile_s=1024):
    B, C, H, W = rgb.shape
    Bp, Cp, Hin, Win = pre_cmmfa.shape
    assert Bp == B and Hin == 2 * H and Win == 2 * W
    S = H * W
    K = 9 * Cp

    # Lane-dense tile: multiple of 128, capped at the padded spatial extent.
    # (tile_s is the per-chip tuning knob; sweep 512..2048 on v5e/v6e,
    #  keep the VMEM budget below ~48 MiB on v7x.)
    tile_s = max(128, (min(int(tile_s), _round_up(S, 128)) // 128) * 128)
    S_pad = _round_up(S, tile_s)

    # ---- im2col for the 3x3 / stride-2 / pad-1 conv (cheap XLA glue) -------
    # TODO(synk): replace with an in-kernel halo DMA (memory_space=pl.ANY +
    # make_async_copy) to remove the remaining patch-tensor HBM round-trip.
    padded = jnp.pad(pre_cmmfa, ((0, 0), (0, 0), (1, 1), (1, 1)))
    taps = [padded[:, :, kh:kh + 2 * H:2, kw:kw + 2 * W:2]
            for kh in range(3) for kw in range(3)]
    patches = jnp.concatenate(taps, axis=1).reshape(B, K, S)   # (B, 9*Cp, S)
    patches = patches.astype(jnp.bfloat16)                     # halve HBM bytes

    # ---- activations: NCHW -> (B, C, S) is a free reshape (no transpose) ---
    rgb_rows = rgb.reshape(B, C, S)
    depth_rows = depth.reshape(B, C, S)

    def pad_s(x):  # pad spatial so tile_s | S_pad; pad region is sliced away.
        if x.shape[-1] == S_pad:
            return x
        return jnp.pad(x, [(0, 0)] * (x.ndim - 1) + [(0, S_pad - x.shape[-1])])

    patches, rgb_rows, depth_rows = map(pad_s, (patches, rgb_rows, depth_rows))

    # ---- fold rho / gamma into the weights (re-done every forward call) ----
    rho = params["rho"].reshape(())
    gamma = params["gamma"].reshape(())
    wp = params["w_p2c"].transpose(0, 2, 3, 1).reshape(C, K)   # (C, 9*Cp), (kh,kw,ci)
    wm = params["w_merge"].reshape(C, C)                       # (Cout, Cin)
    w1 = params["w_c1"].reshape(C, C)
    w2 = params["w_c2"].reshape(C, C)

    wp_f = ((1.0 - rho) * wp).astype(jnp.bfloat16)
    wm_rgb = (rho * gamma * wm).astype(jnp.bfloat16)
    wm_dep = (rho * (1.0 - gamma) * wm).astype(jnp.bfloat16)
    b_pre = ((1.0 - rho) * params["b_p2c"] + rho * params["b_merge"]).reshape(C, 1)
    w12 = jnp.concatenate([w1, w2], axis=0).astype(jnp.bfloat16)      # (2C, C)
    b12 = jnp.concatenate([params["b_c1"], params["b_c2"]]).reshape(2 * C, 1)

    # ---- pallas_call --------------------------------------------------------
    grid = (B, S_pad // tile_s)

    def act_spec(c):
        return pl.BlockSpec((None, c, tile_s), lambda b, i: (b, 0, i))

    def w_spec(r, c):
        return pl.BlockSpec((r, c), lambda b, i: (0, 0))

    out_shapes = tuple(jax.ShapeDtypeStruct((B, C, S_pad), jnp.float32)
                       for _ in range(3))

    # VMEM budget: double-buffered streamed blocks + resident weights + slack.
    est = (2 * tile_s * (K * 2 + 2 * C * 4 + 3 * C * 4)      # act streams
           + 2 * 2 * (C * K + 4 * C * C)                     # weights (bf16, 2buf)
           + (1 << 20))
    vmem_limit = int(min(48 * 2**20, max(16 * 2**20, 4 * est)))

    rgb_o, depth_o, pre_o = pl.pallas_call(
        cmmfa_kernel,
        grid=grid,
        in_specs=[
            act_spec(K), act_spec(C), act_spec(C),
            w_spec(C, K), w_spec(C, C), w_spec(C, C), w_spec(C, 1),
            w_spec(2 * C, C), w_spec(2 * C, 1),
        ],
        out_specs=[act_spec(C), act_spec(C), act_spec(C)],
        out_shape=out_shapes,
        compiler_params=pltpu.CompilerParams(
            dimension_semantics=("parallel", "parallel"),
            vmem_limit_bytes=vmem_limit),
    )(patches, rgb_rows, depth_rows, wp_f, wm_rgb, wm_dep, b_pre, w12, b12)

    def from_rows(x):  # (B, C, S_pad) -> (B, C, H, W), free (slice + reshape)
        return x[:, :, :S].reshape(B, C, H, W)

    return from_rows(rgb_o), from_rows(depth_o), from_rows(pre_o)


# ----------------------------------------------------------------------------
# Pure-JAX reference (f32, lax.conv) for verification.
# ----------------------------------------------------------------------------
def cmmfa_reference(rgb, depth, pre_cmmfa, params):
    dn = ("NCHW", "OIHW", "NCHW")

    def conv(x, w, b, stride, pad):
        y = lax.conv_general_dilated(x, w, (stride, stride), pad,
                                     dimension_numbers=dn)
        return y + b[None, :, None, None]

    rho = params["rho"]
    gamma = params["gamma"]
    p2c = conv(pre_cmmfa, params["w_p2c"], params["b_p2c"], 2, ((1, 1), (1, 1)))
    merge = conv(gamma * rgb + (1.0 - gamma) * depth,
                 params["w_merge"], params["b_merge"], 1, "VALID")
    pre = (1.0 - rho) * p2c + rho * merge
    rgb_new = rgb + jax.nn.sigmoid(
        conv(pre, params["w_c1"], params["b_c1"], 1, "VALID")) * (rgb + depth)
    depth_new = depth + jax.nn.sigmoid(
        conv(pre, params["w_c2"], params["b_c2"], 1, "VALID")) * (depth + rgb_new)
    return rgb_new, depth_new, pre


# ----------------------------------------------------------------------------
# Deterministic parameter init (matching the module's __init__ shapes).
# ----------------------------------------------------------------------------
def init_params(key, pre_channel, cur_channel):
    ks = jax.random.split(key, 8)
    s = 0.1
    return {
        "rho": jnp.full((1, 1, 1, 1), 1.0, jnp.float32),    # rho.data.fill_(1.0)
        "gamma": jnp.full((1, 1, 1, 1), 0.5, jnp.float32),  # gamma.data.fill_(0.5)
        "w_p2c": s * jax.random.normal(ks[0], (cur_channel, pre_channel, 3, 3), jnp.float32),
        "b_p2c": s * jax.random.normal(ks[1], (cur_channel,), jnp.float32),
        "w_merge": s * jax.random.normal(ks[2], (cur_channel, cur_channel, 1, 1), jnp.float32),
        "b_merge": s * jax.random.normal(ks[3], (cur_channel,), jnp.float32),
        "w_c1": s * jax.random.normal(ks[4], (cur_channel, cur_channel, 1, 1), jnp.float32),
        "b_c1": s * jax.random.normal(ks[5], (cur_channel,), jnp.float32),
        "w_c2": s * jax.random.normal(ks[6], (cur_channel, cur_channel, 1, 1), jnp.float32),
        "b_c2": s * jax.random.normal(ks[7], (cur_channel,), jnp.float32),
    }


if __name__ == "__main__":
    key = jax.random.PRNGKey(0)
    B, pre_channel, cur_channel, H, W = 2, 4, 4, 16, 16

    kp, k1, k2, k3 = jax.random.split(key, 4)
    params = init_params(kp, pre_channel, cur_channel)

    rgb = jax.random.normal(k1, (B, cur_channel, H, W), jnp.float32)
    depth = jax.random.normal(k2, (B, cur_channel, H, W), jnp.float32)
    pre_cmmfa = jax.random.normal(k3, (B, pre_channel, 2 * H, 2 * W), jnp.float32)

    fwd = jax.jit(functools.partial(cmmfa_forward, tile_s=512))
    rgb_o, depth_o, pre_o = jax.block_until_ready(fwd(rgb, depth, pre_cmmfa, params))

    # Verify against the f32 reference; bf16 matmul operands (f32 accumulation)
    # need a slightly looser tolerance than a pure-f32 kernel.
    rgb_r, depth_r, pre_r = cmmfa_reference(rgb, depth, pre_cmmfa, params)
    tol = dict(atol=3e-2, rtol=3e-2)
    assert jnp.allclose(rgb_o, rgb_r, **tol)
    assert jnp.allclose(depth_o, depth_r, **tol)
    assert jnp.allclose(pre_o, pre_r, **tol)

    print("KERNEL_OK")
</pallas_src>

<mosaic_0001>
module attributes {stable_mosaic.version = 11 : i64} {
  func.func @cmmfa_kernel(%arg0: i32, %arg1: i32, %arg2: memref<1x36x256xbf16, #tpu.memory_space<vmem>>, %arg3: memref<1x4x256xf32, #tpu.memory_space<vmem>>, %arg4: memref<1x4x256xf32, #tpu.memory_space<vmem>>, %arg5: memref<4x36xbf16, #tpu.memory_space<vmem>>, %arg6: memref<4x4xbf16, #tpu.memory_space<vmem>>, %arg7: memref<4x4xbf16, #tpu.memory_space<vmem>>, %arg8: memref<4x1xf32, #tpu.memory_space<vmem>>, %arg9: memref<8x4xbf16, #tpu.memory_space<vmem>>, %arg10: memref<8x1xf32, #tpu.memory_space<vmem>>, %arg11: memref<1x4x256xf32, #tpu.memory_space<vmem>>, %arg12: memref<1x4x256xf32, #tpu.memory_space<vmem>>, %arg13: memref<1x4x256xf32, #tpu.memory_space<vmem>>) attributes {dimension_semantics = [#tpu.dimension_semantics<parallel>, #tpu.dimension_semantics<parallel>], iteration_bounds = array<i64: 2, 1>, scalar_prefetch = 0 : i64, scratch_operands = 0 : i64, tpu.core_type = #tpu.core_type<tc>, window_params = [{transform_indices = @transform_0, window_bounds = array<i64: 1, 36, 256>}, {transform_indices = @transform_1, window_bounds = array<i64: 1, 4, 256>}, {transform_indices = @transform_2, window_bounds = array<i64: 1, 4, 256>}, {pipeline_mode = #tpu.pipeline_mode<synchronous>, transform_indices = @transform_3, window_bounds = array<i64: 4, 36>}, {pipeline_mode = #tpu.pipeline_mode<synchronous>, transform_indices = @transform_4, window_bounds = array<i64: 4, 4>}, {pipeline_mode = #tpu.pipeline_mode<synchronous>, transform_indices = @transform_5, window_bounds = array<i64: 4, 4>}, {pipeline_mode = #tpu.pipeline_mode<synchronous>, transform_indices = @transform_6, window_bounds = array<i64: 4, 1>}, {pipeline_mode = #tpu.pipeline_mode<synchronous>, transform_indices = @transform_7, window_bounds = array<i64: 8, 4>}, {pipeline_mode = #tpu.pipeline_mode<synchronous>, transform_indices = @transform_8, window_bounds = array<i64: 8, 1>}, {transform_indices = @transform_9, window_bounds = array<i64: 1, 4, 256>}, {transform_indices = @transform_10, window_bounds = array<i64: 1, 4, 256>}, {transform_indices = @transform_11, window_bounds = array<i64: 1, 4, 256>}]} {
    %c0 = arith.constant 0 : index
    %c0_0 = arith.constant 0 : index
    %c0_1 = arith.constant 0 : index
    %0 = vector.load %arg3[%c0, %c0_0, %c0_1] : memref<1x4x256xf32, #tpu.memory_space<vmem>>, vector<1x4x256xf32>
    %1 = vector.shape_cast %0 : vector<1x4x256xf32> to vector<4x256xf32>
    %c0_2 = arith.constant 0 : index
    %c0_3 = arith.constant 0 : index
    %c0_4 = arith.constant 0 : index
    %2 = vector.load %arg4[%c0_2, %c0_3, %c0_4] : memref<1x4x256xf32, #tpu.memory_space<vmem>>, vector<1x4x256xf32>
    %3 = vector.shape_cast %2 : vector<1x4x256xf32> to vector<4x256xf32>
    %c0_5 = arith.constant 0 : index
    %c0_6 = arith.constant 0 : index
    %4 = vector.load %arg5[%c0_5, %c0_6] : memref<4x36xbf16, #tpu.memory_space<vmem>>, vector<4x36xbf16>
    %c0_7 = arith.constant 0 : index
    %c0_8 = arith.constant 0 : index
    %c0_9 = arith.constant 0 : index
    %5 = vector.load %arg2[%c0_7, %c0_8, %c0_9] : memref<1x36x256xbf16, #tpu.memory_space<vmem>>, vector<1x36x256xbf16>
    %6 = vector.shape_cast %5 : vector<1x36x256xbf16> to vector<36x256xbf16>
    %cst = arith.constant dense<0.000000e+00> : vector<4x256xf32>
    %7 = tpu.matmul %4, %6, %cst {dimension_numbers = #tpu.dot_dimension_numbers<[1], [0], [0], [1], [0, 0, 1, 1], [], []>} : vector<4x36xbf16>, vector<36x256xbf16>, vector<4x256xf32> -> vector<4x256xf32>
    %c0_10 = arith.constant 0 : index
    %c0_11 = arith.constant 0 : index
    %8 = vector.load %arg6[%c0_10, %c0_11] : memref<4x4xbf16, #tpu.memory_space<vmem>>, vector<4x4xbf16>
    %9 = arith.truncf %1 : vector<4x256xf32> to vector<4x256xbf16>
    %cst_12 = arith.constant dense<0.000000e+00> : vector<4x256xf32>
    %10 = tpu.matmul %8, %9, %cst_12 {dimension_numbers = #tpu.dot_dimension_numbers<[1], [0], [0], [1], [0, 0, 1, 1], [], []>} : vector<4x4xbf16>, vector<4x256xbf16>, vector<4x256xf32> -> vector<4x256xf32>
    %11 = arith.addf %7, %10 : vector<4x256xf32>
    %c0_13 = arith.constant 0 : index
    %c0_14 = arith.constant 0 : index
    %12 = vector.load %arg7[%c0_13, %c0_14] : memref<4x4xbf16, #tpu.memory_space<vmem>>, vector<4x4xbf16>
    %13 = arith.truncf %3 : vector<4x256xf32> to vector<4x256xbf16>
    %cst_15 = arith.constant dense<0.000000e+00> : vector<4x256xf32>
    %14 = tpu.matmul %12, %13, %cst_15 {dimension_numbers = #tpu.dot_dimension_numbers<[1], [0], [0], [1], [0, 0, 1, 1], [], []>} : vector<4x4xbf16>, vector<4x256xbf16>, vector<4x256xf32> -> vector<4x256xf32>
    %15 = arith.addf %11, %14 : vector<4x256xf32>
    %c0_16 = arith.constant 0 : index
    %c0_17 = arith.constant 0 : index
    %16 = vector.load %arg8[%c0_16, %c0_17] : memref<4x1xf32, #tpu.memory_space<vmem>>, vector<4x1xf32>
    %17 = vector.broadcast %16 : vector<4x1xf32> to vector<4x256xf32>
    %18 = arith.addf %15, %17 : vector<4x256xf32>
    %c0_18 = arith.constant 0 : index
    %c0_19 = arith.constant 0 : index
    %19 = vector.load %arg9[%c0_18, %c0_19] : memref<8x4xbf16, #tpu.memory_space<vmem>>, vector<8x4xbf16>
    %20 = arith.truncf %18 : vector<4x256xf32> to vector<4x256xbf16>
    %cst_20 = arith.constant dense<0.000000e+00> : vector<8x256xf32>
    %21 = tpu.matmul %19, %20, %cst_20 {dimension_numbers = #tpu.dot_dimension_numbers<[1], [0], [0], [1], [0, 0, 1, 1], [], []>} : vector<8x4xbf16>, vector<4x256xbf16>, vector<8x256xf32> -> vector<8x256xf32>
    %c0_21 = arith.constant 0 : index
    %c0_22 = arith.constant 0 : index
    %22 = vector.load %arg10[%c0_21, %c0_22] : memref<8x1xf32, #tpu.memory_space<vmem>>, vector<8x1xf32>
    %23 = vector.broadcast %22 : vector<8x1xf32> to vector<8x256xf32>
    %24 = arith.addf %21, %23 : vector<8x256xf32>
    %25 = arith.negf %24 : vector<8x256xf32>
    %26 = math.exp %25 : vector<8x256xf32>
    %cst_23 = arith.constant 1.000000e+00 : f32
    %27 = vector.broadcast %cst_23 : f32 to vector<8x256xf32>
    %28 = arith.addf %27, %26 : vector<8x256xf32>
    %29 = arith.divf %27, %28 : vector<8x256xf32>
    %30 = vector.extract_strided_slice %29 {offsets = [0, 0], sizes = [4, 256], strides = [1, 1]} : vector<8x256xf32> to vector<4x256xf32>
    %31 = vector.extract_strided_slice %29 {offsets = [4, 0], sizes = [4, 256], strides = [1, 1]} : vector<8x256xf32> to vector<4x256xf32>
    %32 = arith.addf %1, %3 : vector<4x256xf32>
    %33 = arith.mulf %30, %32 : vector<4x256xf32>
    %34 = arith.addf %1, %33 : vector<4x256xf32>
    %35 = arith.addf %3, %34 : vector<4x256xf32>
    %36 = arith.mulf %31, %35 : vector<4x256xf32>
    %37 = arith.addf %3, %36 : vector<4x256xf32>
    %c0_24 = arith.constant 0 : index
    %c0_25 = arith.constant 0 : index
    %c0_26 = arith.constant 0 : index
    %38 = vector.load %arg11[%c0_24, %c0_25, %c0_26] : memref<1x4x256xf32, #tpu.memory_space<vmem>>, vector<1x4x256xf32>
    %39 = vector.shape_cast %38 : vector<1x4x256xf32> to vector<4x256xf32>
    %40 = vector.shape_cast %34 : vector<4x256xf32> to vector<1x4x256xf32>
    tpu.vector_store %arg11[%c0_24, %c0_25, %c0_26], %40 {strides = array<i32>} : memref<1x4x256xf32, #tpu.memory_space<vmem>>, vector<1x4x256xf32>,
    %c0_27 = arith.constant 0 : index
    %c0_28 = arith.constant 0 : index
    %c0_29 = arith.constant 0 : index
    %41 = vector.load %arg12[%c0_27, %c0_28, %c0_29] : memref<1x4x256xf32, #tpu.memory_space<vmem>>, vector<1x4x256xf32>
    %42 = vector.shape_cast %41 : vector<1x4x256xf32> to vector<4x256xf32>
    %43 = vector.shape_cast %37 : vector<4x256xf32> to vector<1x4x256xf32>
    tpu.vector_store %arg12[%c0_27, %c0_28, %c0_29], %43 {strides = array<i32>} : memref<1x4x256xf32, #tpu.memory_space<vmem>>, vector<1x4x256xf32>,
    %c0_30 = arith.constant 0 : index
    %c0_31 = arith.constant 0 : index
    %c0_32 = arith.constant 0 : index
    %44 = vector.load %arg13[%c0_30, %c0_31, %c0_32] : memref<1x4x256xf32, #tpu.memory_space<vmem>>, vector<1x4x256xf32>
    %45 = vector.shape_cast %44 : vector<1x4x256xf32> to vector<4x256xf32>
    %46 = vector.shape_cast %18 : vector<4x256xf32> to vector<1x4x256xf32>
    tpu.vector_store %arg13[%c0_30, %c0_31, %c0_32], %46 {strides = array<i32>} : memref<1x4x256xf32, #tpu.memory_space<vmem>>, vector<1x4x256xf32>,
    return
  }
  func.func @transform_0(%arg0: i32, %arg1: i32) -> (i32, i32, i32) {
    %c0_i32 = arith.constant 0 : i32
    %c0_i32_0 = arith.constant 0 : i32
    return %arg0, %c0_i32, %arg1 : i32, i32, i32
  }
  func.func @transform_1(%arg0: i32, %arg1: i32) -> (i32, i32, i32) {
    %c0_i32 = arith.constant 0 : i32
    %c0_i32_0 = arith.constant 0 : i32
    return %arg0, %c0_i32, %arg1 : i32, i32, i32
  }
  func.func @transform_2(%arg0: i32, %arg1: i32) -> (i32, i32, i32) {
    %c0_i32 = arith.constant 0 : i32
    %c0_i32_0 = arith.constant 0 : i32
    return %arg0, %c0_i32, %arg1 : i32, i32, i32
  }
  func.func @transform_3(%arg0: i32, %arg1: i32) -> (i32, i32) {
    %c0_i32 = arith.constant 0 : i32
    %c0_i32_0 = arith.constant 0 : i32
    %c0_i32_1 = arith.constant 0 : i32
    return %c0_i32, %c0_i32_0 : i32, i32
  }
  func.func @transform_4(%arg0: i32, %arg1: i32) -> (i32, i32) {
    %c0_i32 = arith.constant 0 : i32
    %c0_i32_0 = arith.constant 0 : i32
    %c0_i32_1 = arith.constant 0 : i32
    return %c0_i32, %c0_i32_0 : i32, i32
  }
  func.func @transform_5(%arg0: i32, %arg1: i32) -> (i32, i32) {
    %c0_i32 = arith.constant 0 : i32
    %c0_i32_0 = arith.constant 0 : i32
    %c0_i32_1 = arith.constant 0 : i32
    return %c0_i32, %c0_i32_0 : i32, i32
  }
  func.func @transform_6(%arg0: i32, %arg1: i32) -> (i32, i32) {
    %c0_i32 = arith.constant 0 : i32
    %c0_i32_0 = arith.constant 0 : i32
    %c0_i32_1 = arith.constant 0 : i32
    return %c0_i32, %c0_i32_0 : i32, i32
  }
  func.func @transform_7(%arg0: i32, %arg1: i32) -> (i32, i32) {
    %c0_i32 = arith.constant 0 : i32
    %c0_i32_0 = arith.constant 0 : i32
    %c0_i32_1 = arith.constant 0 : i32
    return %c0_i32, %c0_i32_0 : i32, i32
  }
  func.func @transform_8(%arg0: i32, %arg1: i32) -> (i32, i32) {
    %c0_i32 = arith.constant 0 : i32
    %c0_i32_0 = arith.constant 0 : i32
    %c0_i32_1 = arith.constant 0 : i32
    return %c0_i32, %c0_i32_0 : i32, i32
  }
  func.func @transform_9(%arg0: i32, %arg1: i32) -> (i32, i32, i32) {
    %c0_i32 = arith.constant 0 : i32
    %c0_i32_0 = arith.constant 0 : i32
    return %arg0, %c0_i32, %arg1 : i32, i32, i32
  }
  func.func @transform_10(%arg0: i32, %arg1: i32) -> (i32, i32, i32) {
    %c0_i32 = arith.constant 0 : i32
    %c0_i32_0 = arith.constant 0 : i32
    return %arg0, %c0_i32, %arg1 : i32, i32, i32
  }
  func.func @transform_11(%arg0: i32, %arg1: i32) -> (i32, i32, i32) {
    %c0_i32 = arith.constant 0 : i32
    %c0_i32_0 = arith.constant 0 : i32
    return %arg0, %c0_i32, %arg1 : i32, i32, i32
  }
}

</mosaic_0001>

<bundles_post_ra>
// kernel: cmmfa_forward.1
= control target key start
LH: loop header
LB: loop body
LE: loop exit
PB: predicated region body
PF: predicated region fallthrough
CT: control target
= control target key end

     0   :  { %s1235_s17 = smov 0   ;;  %s1237_s18 = smov 0   ;;  %s1343_s0 = inlined_call_operand.vmem [shape: bf16[2,36,256], index: 0, kind: input, shape index: {}]   ;;  %s1344_s1 = inlined_call_operand.vmem [shape: f32[2,4,256], index: 1, kind: input, shape index: {}]   ;;  %s1345_s2 = inlined_call_operand.vmem [shape: f32[2,4,256], index: 2, kind: input, shape index: {}]   ;;  %s1346_s3 = inlined_call_operand.vmem [shape: bf16[4,36], index: 3, kind: input, shape index: {}]   ;;  %s1347_s4 = inlined_call_operand.vmem [shape: bf16[4,4], index: 4, kind: input, shape index: {}]   ;;  %s1348_s5 = inlined_call_operand.vmem [shape: bf16[4,4], index: 5, kind: input, shape index: {}]   ;;  %s1349_s6 = inlined_call_operand.vmem [shape: f32[4,1], index: 6, kind: input, shape index: {}]   ;;  %s1350_s7 = inlined_call_operand.vmem [shape: bf16[8,4], index: 7, kind: input, shape index: {}]   ;;  %s1351_s8 = inlined_call_operand.vmem [shape: f32[8,1], index: 8, kind: input, shape index: {}]   ;;  %s1352_s9 = inlined_call_operand.vmem [shape: f32[2,4,256], index: 9, kind: output, shape index: {0}]   ;;  %s1353_s10 = inlined_call_operand.vmem [shape: f32[2,4,256], index: 10, kind: output, shape index: {1}]   ;;  %s1354_s11 = inlined_call_operand.vmem [shape: f32[2,4,256], index: 11, kind: output, shape index: {2}]  }
   0x1   :  { %s1239_s19 = smov 0  }
   0x2 LB: > { %s34_s20 = sadd.s32 1, %s1168_s18  ;;  %p1066_p0 = scmp.ge.s32.totalorder %s1172_s19, 1  ;;  %s1172_s19 = sphi %s1239_s19, %s22_s19   ;;  %s1168_s18 = sphi %s1237_s18, %s1356_s18   ;;  %s1164_s17 = sphi %s1235_s17, %s1355_s17  }
   0x3   : > { %p36_p1 = scmp.ge.s32.totalorder %s34_s20, 2  ;;  %p401_p2 = scmp.lt.s32.totalorder %s1172_s19, 3 }
   0x5   : > { %s1358_s20 = smov (%p36_p1, %s34_s20), 0  ;;  %p402_p3 = pnand %p1066_p0, %p401_p2 }
   0x6   : > { %p486_p4 = scmp.lt.s32.totalorder (!%p402_p3), %s1164_s17, 1 }
   0x7   : > { %405 = sbr.rel (%p402_p3) target bundleno = 376 (0x178), region = 56 }
   0xc   : > { %s1360_s17 = smov (!%p486_p4, %s1164_s17), 1  ;;  %v707_v0 = vld [vmem:[%s1349_s6] sm:$0xf]  ;;  %v1174_v2 = vmov 0   ;;  %vm567_vm0 = vcmask 1041408   ;;  %vm563_vm1 = vcmask 31744  }
   0xd   : > { %s1115_s21 = smul.u32 40, %s1360_s17  ;;  %s1253_s22 = sshll.u32 %s1360_s17, 3  ;;  %1141 = vset.pattern.permute.xlu0 %v1174_v2  ;;  %v718_v15 = vld [vmem:[%s1351_s8] sm:$0xff]  ;;  %vm625_vm2 = vcmask 293888   ;;  %vm809_vm3 = vcmask 1043456  }
   0xe   : > { %s503_s25 = scalar_lea.vmem %s1344_s1, %s1253_s22  ;;  %710 = vperm.xlu0 %1141, %v707_v0   ;;  %s513_s14 = scalar_lea.vmem %s1345_s2, %s1253_s22  ;;  %v554_v28 = vld [vmem:[%s1347_s4] sm:$0x3] }
   0xf   : > { %s1265_s30 = scalar_lea.vmem %s1343_s0, %s1115_s21  ;;  %v1267_v1 = vld [vmem:[%s503_s25] sm:$0xff]  ;;  %s543_s29 = scalar_lea.vmem %s1354_s11, %s1253_s22 }
  0x10   : > { %v553_v3 = vld [vmem:[%s1265_s30 + $0x20] sm:$0x33]  ;;  %556 = vst [vmem:[#allocation1] ss:$2 sm:$0xff] %v1267_v1  ;;  %v1090_v6 = vld [vmem:[%s1265_s30 + $0x10] sm:$0xf]  ;;  %s523_s15 = scalar_lea.vmem %s1352_s9, %s1253_s22  ;;  %s533_s21 = scalar_lea.vmem %s1353_s10, %s1253_s22 }
  0x11   : > { %v613_v4 = vunpack.c.l.b16 %v553_v3  ;;  %v614_v5 = vunpack.c.h.b16 %v553_v3  ;;  %v1114_v9 = vld [vmem:[%s1265_s30 + $0x14] sm:$0xf0]  ;;  %v1113_v10 = vld [vmem:[%s1265_s30 + $0x14] sm:$0xf]  ;;  %v1092_v11 = vld [vmem:[%s1265_s30 + $0x18] sm:$0xf0] }
  0x12   : > { %v1281_v14 = vld [vmem:[%s513_s14] sm:$0xff]  ;;  %v1091_v16 = vor.u32 %v1114_v9, %v1090_v6  ;;  %v1095_v17 = vor.u32 %v1113_v10, %v1092_v11  ;;  %v1112_v19 = vld [vmem:[%s1265_s30 + $0x4] sm:$0xf0]  ;;  %v1084_v25 = vld [vmem:[%s1265_s30 + $0x8] sm:$0xf0] }
  0x13   : > { %v619_v7 = vpack.c.b16 %v613_v4, %v613_v4  ;;  %v620_v8 = vpack.c.b16 %v614_v5, %v614_v5  ;;  %v1082_v18 = vld [vmem:[%s1265_s30] sm:$0xf]  ;;  %v1111_v24 = vld [vmem:[%s1265_s30 + $0x4] sm:$0xf]  ;;  %v797_v31 = vadd.f32 %v1281_v14, %v1267_v1 }
  0x14   : > { %v1083_v29 = vor.u32 %v1112_v19, %v1082_v18  ;;  %v1087_v30 = vor.u32 %v1111_v24, %v1084_v25  ;;  %v548_v32 = vld [vmem:[%s1346_s3] sm:$0x3] }
  0x15   : > { %v630_v12 = vsel %vm567_vm0, %v619_v7, 0  ;;  %v633_v13 = vsel %vm567_vm0, %v620_v8, 0  ;;  %v661_v39 = vld [vmem:[%s1348_s5] sm:$0x3] }
  0x16   : > { %640 = vmatpush.bf16.msra.mxu2 %v630_v12  ;;  %653 = vmatpush.bf16.msra.mxu3 %v633_v13  ;;  %v715_v2 = vld [vmem:[%s1350_s7] sm:$0xf] }
  0x17   : > { %v557_v20 = vld.sshfl [vmem:[#allocation1] sm:$0xff pattern:$0x75316420]  ;;  %v558_v21 = vld.sshfl [vmem:[#allocation1 + $0x8] sm:$0xff pattern:$0x75316420]  ;;  %721 = vperm.xlu0 %1141, %v718_v15  }
  0x18   : > { %v561_v22 = vpack.c.bf16 %v557_v20, %v557_v20  ;;  %v562_v23 = vpack.c.bf16 %v558_v21, %v558_v21  ;;  %663 = vst [vmem:[#allocation1] ss:$2 sm:$0xff] %v1281_v14 }
  0x1a   : > { %641 = vmatpush.bf16.msra.mxu2 %v1091_v16  ;;  %654 = vmatpush.bf16.msra.mxu3 %v1095_v17  ;;  %v569_v26 = vsel %vm567_vm0, %v561_v22, 0  ;;  %v572_v27 = vsel %vm567_vm0, %v562_v23, 0 }
  0x1b   : > { %581 = vmatpush.bf16.msra.mxu0 %v569_v26  ;;  %594 = vmatpush.bf16.msra.mxu1 %v572_v27 }
  0x1e   : > { %1078 = vmatmul.msk.bf16.vlgmr.msra.gmra.mxu0 %vm563_vm1, %v554_v28  ;;  %1079 = vmatmul.msk.bf16.vlgmr.msra.gmra.mxu1 %vm563_vm1, %v554_v28 }
  0x1f   : > { %642 = vmatpush.bf16.msra.mxu2 %v1083_v29  ;;  %655 = vmatpush.bf16.msra.mxu3 %v1087_v30  ;;  %v664_v33 = vld.sshfl [vmem:[#allocation1] sm:$0xff pattern:$0x75316420]  ;;  %v665_v34 = vld.sshfl [vmem:[#allocation1 + $0x8] sm:$0xff pattern:$0x75316420] }
  0x20   : > { %v668_v35 = vpack.c.bf16 %v664_v33, %v664_v33  ;;  %v669_v36 = vpack.c.bf16 %v665_v34, %v665_v34  ;;  %799 = vst [vmem:[#allocation1] ss:$2 sm:$0xff] %v797_v31 }
  0x22   : > { %1096 = vmatmul.msk.bf16.vlgmr.msra.gmra.mxu2 %vm625_vm2, %v548_v32  ;;  %1097 = vmatmul.msk.bf16.vlgmr.msra.gmra.mxu3 %vm625_vm2, %v548_v32  ;;  %v674_v37 = vsel %vm567_vm0, %v668_v35, 0  ;;  %v677_v38 = vsel %vm567_vm0, %v669_v36, 0 }
  0x23   : > { %686 = vmatpush.bf16.msrb.mxu0 %v674_v37  ;;  %699 = vmatpush.bf16.msrb.mxu1 %v677_v38 }
  0x27   : > { %v801_v34 = vld.sshfl [vmem:[#allocation1 + $0x8] sm:$0xff pattern:$0x75316420]  ;;  %v800_v37 = vld.sshfl [vmem:[#allocation1] sm:$0xff pattern:$0x75316420] }
  0x2e   : > { %1098 = vmatmul.msk.bf16.vlgmr.msrb.gmra.mxu0 %vm563_vm1, %v661_v39  ;;  %1099 = vmatmul.msk.bf16.vlgmr.msrb.gmra.mxu1 %vm563_vm1, %v661_v39 }
  0x80   : > { %v711_v50 = vpop.permute.xlu0 %710 }
  0x89   : > { %v722_v3 = vpop.permute.xlu0 %721 }
  0x9b   : > { %v583_v40 = vpop.f32.mrf.mxu0  ;;  %v596_v41 = vpop.f32.mrf.mxu1 }
  0xa3   : > { %v585_v42 = vpop.f32.mrf.mxu0  ;;  %v598_v43 = vpop.f32.mrf.mxu1 }
  0xa5   : > { %v644_v44 = vpop.f32.mrf.mxu2  ;;  %v657_v45 = vpop.f32.mrf.mxu3 }
  0xa6   : > { %v645_v46 = vadd.f32 %v644_v44, %v583_v40  ;;  %v658_v47 = vadd.f32 %v657_v45, %v596_v41 }
  0xab   : > { %v688_v48 = vpop.f32.mrf.mxu0  ;;  %v701_v49 = vpop.f32.mrf.mxu1 }
  0xac   : > { %v705_v51 = vadd.f32 %v688_v48, %v645_v46  ;;  %v706_v52 = vadd.f32 %v701_v49, %v658_v47 }
  0xad   : > { %v646_v53 = vpop.f32.mrf.mxu2  ;;  %v659_v54 = vpop.f32.mrf.mxu3 }
  0xae   : > { %v713_v55 = vadd.f32 %v711_v50, %v705_v51  ;;  %v714_v56 = vadd.f32 %v711_v50, %v706_v52 }
  0xb0   : > { %v835_v57 = vrot.slane %v714_v56, 4  ;;  %v716_v58 = vpack.c.bf16 %v713_v55, %v713_v55  ;;  %v717_v59 = vpack.c.bf16 %v714_v56, %v714_v56 }
  0xb2   : > { %v836_v60 = vsel %vm809_vm3, %v713_v55, %v835_v57  ;;  %v728_v61 = vsel %vm567_vm0, %v716_v58, 0  ;;  %v731_v62 = vsel %vm567_vm0, %v717_v59, 0 }
  0xb3   : > { %838 = vst [vmem:[%s543_s29] sm:$0xff] %v836_v60  ;;  %v690_v63 = vpop.f32.mrf.mxu0  ;;  %v703_v0 = vpop.f32.mrf.mxu1  ;;  %740 = vmatpush.bf16.msrb.mxu2 %v728_v61  ;;  %753 = vmatpush.bf16.msrb.mxu3 %v731_v62 }
  0xb6   : > { %1100 = vmatmul.msk.bf16.vlgmr.msrb.gmra.mxu2 %vm563_vm1, %v715_v2  ;;  %1101 = vmatmul.msk.bf16.vlgmr.msrb.gmra.mxu3 %vm563_vm1, %v715_v2 }
 0x139   : > { %v742_v4 = vpop.f32.mrf.mxu2  ;;  %v755_v5 = vpop.f32.mrf.mxu3 }
 0x13a   : > { %v743_v6 = vadd.f32 %v742_v4, %v722_v3  ;;  %v756_v7 = vadd.f32 %v755_v5, %v722_v3 }
 0x13c   : > { %v1102_v8 = vmul.f32 -1.442695, %v743_v6  ;;  %v1103_v9 = vmul.f32 -1.442695, %v756_v7 }
 0x13e   : > { %1142 = vpow2.f32 %v1102_v8 }
 0x13f   : > { %1144 = vpow2.f32 %v1103_v9 }
 0x141   : > { %v757_v10 = vpop.f32.mrf.mxu3  ;;  %v744_v11 = vpop.f32.mrf.mxu2 }
 0x144   : > { %v1143_v12 = vpop.eup %1142 }
 0x145   : > { %v1145_v13 = vpop.eup %1144  ;;  %v765_v15 = vadd.f32 1.0, %v1143_v12 }
 0x146   : > { %v766_v16 = vadd.f32 1.0, %v1145_v13 }
 0x147   : > { %1146 = vrcp.f32 %v765_v15  ;;  %v778_v24 = vand.u32 2147483648, %v765_v15  ;;  %v776_v26 = vand.u32 2147483647, %v765_v15  ;;  %vm772_vm6 = vweird.f32 %v765_v15 }
 0x148   : > { %1148 = vrcp.f32 %v766_v16  ;;  %v793_v25 = vand.u32 2147483648, %v766_v16  ;;  %v791_v28 = vand.u32 2147483647, %v766_v16  ;;  %vm787_vm8 = vweird.f32 %v766_v16 }
 0x149   : > { %v779_v32 = vor.u32 1.1754944e-38, %v778_v24  ;;  %vm777_vm10 = vcmp.eq.f32.partialorder %v776_v26, 8.507059e+37 }
 0x14a   : > { %v794_v33 = vor.u32 1.1754944e-38, %v793_v25  ;;  %vm792_vm11 = vcmp.eq.f32.partialorder %v791_v28, 8.507059e+37 }
 0x14d   : > { %v1147_v17 = vpop.eup %1146 }
 0x14e   : > { %v1149_v18 = vpop.eup %1148  ;;  %v768_v19 = vmul.f32 %v1147_v17, %v765_v15  ;;  %vm773_vm4 = vweird.f32 %v1147_v17 }
 0x14f   : > { %v783_v20 = vmul.f32 %v1149_v18, %v766_v16  ;;  %vm788_vm5 = vweird.f32 %v1149_v18  ;;  %vm774_vm7 = vmor %vm772_vm6, %vm773_vm4 }
 0x150   : > { %v769_v21 = vsub.f32 1.0, %v768_v19  ;;  %vm789_vm9 = vmor %vm787_vm8, %vm788_vm5 }
 0x151   : > { %v784_v22 = vsub.f32 1.0, %v783_v20 }
 0x152   : > { %v770_v23 = vmul.f32 %v1147_v17, %v769_v21 }
 0x153   : > { %v785_v27 = vmul.f32 %v1149_v18, %v784_v22 }
 0x154   : > { %v771_v29 = vadd.f32 %v1147_v17, %v770_v23 }
 0x155   : > { %v786_v30 = vadd.f32 %v1149_v18, %v785_v27 }
 0x156   : > { %v775_v31 = vsel %vm774_vm7, %v1147_v17, %v771_v29 }
 0x157   : > { %v790_v35 = vsel %vm789_vm9, %v1149_v18, %v786_v30  ;;  %v780_v36 = vsel %vm777_vm10, %v779_v32, %v775_v31 }
 0x158   : > { %v795_v38 = vsel %vm792_vm11, %v794_v33, %v790_v35  ;;  %v804_v40 = vmul.f32 %v800_v37, %v780_v36 }
 0x159   : > { %v805_v39 = vmul.f32 %v801_v34, %v795_v38 }
 0x15b   : > { %v808_v41 = vrot.slane %v805_v39, 4 }
 0x15d   : > { %v810_v42 = vsel %vm809_vm3, %v804_v40, %v808_v41 }
 0x15e   : > { %v812_v43 = vadd.f32 %v810_v42, %v1267_v1 }
 0x160   : > { %v813_v44 = vadd.f32 %v812_v43, %v1281_v14  ;;  %831 = vst [vmem:[%s523_s15] sm:$0xff] %v812_v43 }
 0x162   : > { %816 = vst [vmem:[#allocation1 + $0x1] ss:$2 sm:$0xff] %v813_v44 }
 0x169   : > { %v817_v45 = vld.sshfl [vmem:[#allocation1] sm:$0xff pattern:$0x75316420]  ;;  %v818_v46 = vld.sshfl [vmem:[#allocation1 + $0x8] sm:$0xff pattern:$0x75316420] }
 0x16a   : > { %v821_v47 = vmul.f32 %v817_v45, %v780_v36  ;;  %v822_v48 = vmul.f32 %v818_v46, %v795_v38 }
 0x16c   : > { %825 = vst.sshfl [vmem:[#allocation1] sm:$0xff pattern:$0x75316420] %v821_v47 }
 0x16d   : > { %826 = vst.sshfl [vmem:[#allocation1 + $0x8] sm:$0xff pattern:$0x75316420] %v822_v48 }
 0x174   : > { %v828_v49 = vld [vmem:[#allocation1 + $0x1] ss:$2 sm:$0xff] }
 0x175   : > { %v830_v50 = vadd.f32 %v828_v49, %v1281_v14 }
 0x177   : > { %832 = vst [vmem:[%s533_s21] sm:$0xff] %v830_v50 }
 0x178 PF: > { %s22_s19 = sadd.s32 1, %s1172_s19   ;;  %s1355_s17 = smov %s1168_s18 }
 0x179   : > { %p19_p5 = scmp.ge.s32.totalorder %s22_s19, 4   ;;  %s1356_s18 = smov %s1358_s20 }
 0x17b   :  { %21 = sbr.rel (!%p19_p5) target bundleno = 2 (0x2), region = 118 }

</bundles_post_ra>
